<compile_context>
chip_gen: v6e
topology: v6e:2x2x1
jax: 0.10.0
libtpu: 0.0.40
codegen_flags: <defaults>
</compile_context>

<pallas_src>
import numpy as np
import jax
import jax.numpy as jnp
from jax.experimental import pallas as pl
from jax.experimental.pallas import tpu as pltpu

_LANES = 128


def _complex_to_real_kernel(cs_ref, h_ref, y_ref):
    """cs_ref: SMEM (B, 2) with [cos(-theta), sin(-theta)];
       h_ref:  VMEM (2, TILE_P, 128)  (real, imag);
       y_ref:  VMEM (TILE_P, 128)."""
    b = pl.program_id(0)
    c = cs_ref[b, 0]
    s = cs_ref[b, 1]
    y_ref[...] = (h_ref[0] * c - h_ref[1] * s).astype(y_ref.dtype)


def complex_to_real(h, theta, *, tile_p=2048):
    """h: [B, 2, *rest], theta: [B] -> y: [B, *rest].

    Matches ComplexToReal.forward: y = a*cos(-theta) - b*sin(-theta),
    broadcasting the per-batch angle over all trailing dims (covers both the
    4-D and lower-rank branches of the torch module).
    """
    B = h.shape[0]
    assert h.shape[1] == 2, "expected h of shape [B, 2, ...]"
    assert theta.shape == (B,)
    rest = h.shape[2:]
    N = int(np.prod(rest)) if rest else 1
    dtype = h.dtype
    itemsize = jnp.dtype(dtype).itemsize
    sub_mult = {4: 8, 2: 16, 1: 32}.get(itemsize, 8)

    # ---- lane-dense layout: [B, 2, P, 128] ------------------------------
    if N % _LANES == 0:
        # Free, contiguous reshape: no HBM copy, no pad, no output slice.
        P = N // _LANES
        h_tiled = h.reshape(B, 2, P, _LANES)
        lane_padded = False
    else:
        # TODO(synk): handle the ragged lane tail with a masked pltpu.store
        # instead of a materialized pad + output slice (extra HBM passes).
        P = pl.cdiv(N, _LANES)
        N_pad = P * _LANES
        h_tiled = jnp.pad(h.reshape(B, 2, N),
                          ((0, 0), (0, 0), (0, N_pad - N))).reshape(B, 2, P, _LANES)
        lane_padded = True

    # ---- tile-size selection --------------------------------------------
    TILE_P = min(tile_p, P)
    if B == 1 and P > 1:
        # v7x megacore: make sure there are >= 2 grid steps to shard.
        half = -(-P // 2)                       # ceil(P/2)
        half = -(-half // sub_mult) * sub_mult  # round up to sublane multiple
        if half < P:
            TILE_P = min(TILE_P, half)
    # (8,128)/(16,128) layout rule: a partial tile must keep TILE_P a multiple
    # of the sublane tile; otherwise use the full extent (single tile).
    if TILE_P != P:
        TILE_P = (TILE_P // sub_mult) * sub_mult
        if TILE_P <= 0 or TILE_P >= P:
            TILE_P = P
    num_tiles = pl.cdiv(P, TILE_P)
    grid = (B, num_tiles)

    # ---- per-batch scalars via SMEM scalar prefetch ----------------------
    neg_theta = -theta.astype(jnp.float32)
    cos_sin = jnp.stack([jnp.cos(neg_theta), jnp.sin(neg_theta)], axis=1)  # (B, 2)

    cost = pl.CostEstimate(
        flops=3 * B * N,
        transcendentals=0,
        bytes_accessed=3 * B * N * itemsize,
    )

    y = pl.pallas_call(
        _complex_to_real_kernel,
        out_shape=jax.ShapeDtypeStruct((B, P, _LANES), dtype),
        grid_spec=pltpu.PrefetchScalarGridSpec(
            num_scalar_prefetch=1,
            grid=grid,
            in_specs=[
                # real+imag travel in one slab; batch dim squeezed out.
                pl.BlockSpec((None, 2, TILE_P, _LANES),
                             lambda b, t, cs: (b, 0, t, 0)),
            ],
            out_specs=pl.BlockSpec((None, TILE_P, _LANES),
                                   lambda b, t, cs: (b, t, 0)),
        ),
        compiler_params=pltpu.CompilerParams(
            dimension_semantics=("parallel", "parallel")),
        cost_estimate=cost,
    )(cos_sin, h_tiled)

    # Undo the (free) lane packing; slice only in the padded fallback path.
    y = y.reshape(B, P * _LANES)
    if lane_padded:
        y = y[:, :N]
    return y.reshape((B,) + rest)


def _reference_numpy(h, theta):
    """Direct numpy re-implementation of ComplexToReal.forward."""
    h = np.asarray(h)
    theta = np.asarray(theta)
    a, b = h[:, 0], h[:, 1]
    extra = a.ndim - 1
    ct = np.cos(-theta).reshape((-1,) + (1,) * extra)
    st = np.sin(-theta).reshape((-1,) + (1,) * extra)
    return a * ct - b * st


if __name__ == "__main__":
    key = jax.random.PRNGKey(0)
    k1, k2, k3 = jax.random.split(key, 3)

    # 4-D branch of the torch module: h [B, 2, C, H, W], theta [B]
    B, C, H, W = 2, 4, 16, 16
    h = jax.random.normal(k1, (B, 2, C, H, W), dtype=jnp.float32)
    theta = jax.random.uniform(k2, (B,), dtype=jnp.float32,
                               minval=-np.pi, maxval=np.pi)

    y = complex_to_real(h, theta)
    y = jax.block_until_ready(y)
    ref = _reference_numpy(jax.device_get(h), jax.device_get(theta))
    np.testing.assert_allclose(np.asarray(y), ref, rtol=1e-5, atol=1e-5)
    assert y.shape == (B, C, H, W)

    # Lower-rank branch (a.dim() != 4): h [B, 2, D] — exercises the
    # lane-misaligned fallback path (D=32 not a multiple of 128).
    D = 32
    h2 = jax.random.normal(k3, (B, 2, D), dtype=jnp.float32)
    y2 = jax.block_until_ready(complex_to_real(h2, theta))
    ref2 = _reference_numpy(jax.device_get(h2), jax.device_get(theta))
    np.testing.assert_allclose(np.asarray(y2), ref2, rtol=1e-5, atol=1e-5)
    assert y2.shape == (B, D)

    print("KERNEL_OK")
</pallas_src>

<mosaic_0001>
module attributes {stable_mosaic.version = 11 : i64} {
  func.func @_complex_to_real_kernel(%arg0: i32, %arg1: i32, %arg2: memref<2x2xf32, #tpu.memory_space<smem>>, %arg3: memref<1x2x8x128xf32, #tpu.memory_space<vmem>>, %arg4: memref<1x8x128xf32, #tpu.memory_space<vmem>>) attributes {dimension_semantics = [#tpu.dimension_semantics<parallel>, #tpu.dimension_semantics<parallel>], iteration_bounds = array<i64: 2, 1>, scalar_prefetch = 1 : i64, scratch_operands = 0 : i64, tpu.core_type = #tpu.core_type<tc>, window_params = [{transform_indices = @transform_0, window_bounds = array<i64: 1, 2, 8, 128>}, {transform_indices = @transform_1, window_bounds = array<i64: 1, 8, 128>}]} {
    %0 = arith.index_cast %arg0 : i32 to index
    %c0 = arith.constant 0 : index
    %1 = memref.load %arg2[%0, %c0] : memref<2x2xf32, #tpu.memory_space<smem>>
    %2 = arith.index_cast %arg0 : i32 to index
    %c1 = arith.constant 1 : index
    %3 = memref.load %arg2[%2, %c1] : memref<2x2xf32, #tpu.memory_space<smem>>
    %c0_0 = arith.constant 0 : index
    %c0_1 = arith.constant 0 : index
    %c0_2 = arith.constant 0 : index
    %c0_3 = arith.constant 0 : index
    %4 = vector.load %arg3[%c0_0, %c0_1, %c0_2, %c0_3] : memref<1x2x8x128xf32, #tpu.memory_space<vmem>>, vector<1x1x8x128xf32>
    %5 = vector.shape_cast %4 : vector<1x1x8x128xf32> to vector<8x128xf32>
    %6 = vector.broadcast %1 : f32 to vector<8x128xf32>
    %7 = arith.mulf %5, %6 : vector<8x128xf32>
    %c0_4 = arith.constant 0 : index
    %c1_5 = arith.constant 1 : index
    %c0_6 = arith.constant 0 : index
    %c0_7 = arith.constant 0 : index
    %8 = vector.load %arg3[%c0_4, %c1_5, %c0_6, %c0_7] : memref<1x2x8x128xf32, #tpu.memory_space<vmem>>, vector<1x1x8x128xf32>
    %9 = vector.shape_cast %8 : vector<1x1x8x128xf32> to vector<8x128xf32>
    %10 = vector.broadcast %3 : f32 to vector<8x128xf32>
    %11 = arith.mulf %9, %10 : vector<8x128xf32>
    %12 = arith.subf %7, %11 : vector<8x128xf32>
    %c0_8 = arith.constant 0 : index
    %c0_9 = arith.constant 0 : index
    %c0_10 = arith.constant 0 : index
    %13 = vector.load %arg4[%c0_8, %c0_9, %c0_10] : memref<1x8x128xf32, #tpu.memory_space<vmem>>, vector<1x8x128xf32>
    %14 = vector.shape_cast %13 : vector<1x8x128xf32> to vector<8x128xf32>
    %15 = vector.shape_cast %12 : vector<8x128xf32> to vector<1x8x128xf32>
    tpu.vector_store %arg4[%c0_8, %c0_9, %c0_10], %15 {strides = array<i32>} : memref<1x8x128xf32, #tpu.memory_space<vmem>>, vector<1x8x128xf32>,
    return
  }
  func.func @transform_0(%arg0: i32, %arg1: i32, %arg2: memref<2x2xf32, #tpu.memory_space<smem>>) -> (i32, i32, i32, i32) {
    %c0_i32 = arith.constant 0 : i32
    %c0_i32_0 = arith.constant 0 : i32
    %c0_i32_1 = arith.constant 0 : i32
    return %arg0, %c0_i32, %arg1, %c0_i32_0 : i32, i32, i32, i32
  }
  func.func @transform_1(%arg0: i32, %arg1: i32, %arg2: memref<2x2xf32, #tpu.memory_space<smem>>) -> (i32, i32, i32) {
    %c0_i32 = arith.constant 0 : i32
    %c0_i32_0 = arith.constant 0 : i32
    return %arg0, %arg1, %c0_i32 : i32, i32, i32
  }
}

</mosaic_0001>

<bundles_post_ra>
// kernel: tpu_custom_call.1
= control target key start
LH: loop header
LB: loop body
LE: loop exit
PB: predicated region body
PF: predicated region fallthrough
CT: control target
= control target key end

     0   :  { %s468_s9 = smov [#allocation3]   ;;  %s630_s0 = inlined_call_operand.hbm [shape: f32[2,2], index: 0, kind: input, shape index: {}]   ;;  %s631_s1 = inlined_call_operand.hbm [shape: f32[2,2,8,128], index: 1, kind: input, shape index: {}]   ;;  %s632_s2 = inlined_call_operand.hbm [shape: f32[2,8,128], index: 2, kind: output, shape index: {}]  }
   0x1   :  { %8 = dma.hbm_to_smem %s630_s0, 32, %s468_s9, [#allocation2] }
   0x2   :  { %434 = dma.done.wait [#allocation2], 32 }
   0x3   :  { %435 = vsyncadd [#allocation2], 4294967264 }
   0x4   :  { %10 = sfence }
   0x5   :  { %11 = vsyncpa [#allocation5], 0 }
   0x6   :  { %13 = vsyncpa [#allocation5 + $0x1], 0 }
   0x7   :  { %14 = vsyncpa [#allocation6], 0 }
   0x8   :  { %16 = vsyncpa [#allocation6 + $0x1], 0  ;;  %s491_s12 = smov 0   ;;  %s493_s13 = smov 0  }
   0x9   :  { %s495_s14 = smov 0   ;;  %s497_s15 = smov 0  }
   0xa   :  { %s499_s16 = smov 0   ;;  %s501_s17 = smov 0  }
   0xb LB: > { %s266_s0 = sadd.s32 4294967295, %s466_s17   ;;  %s267_s18 = sadd.s32 4294967294, %s466_s17   ;;  %s466_s17 = sphi %s501_s17, %s22_s17   ;;  %s462_s16 = sphi %s499_s16, %s643_s16   ;;  %s458_s15 = sphi %s497_s15, %s642_s15   ;;  %s454_s14 = sphi %s495_s14, %s641_s14   ;;  %s450_s13 = sphi %s493_s13, %s640_s13   ;;  %s446_s12 = sphi %s491_s12, %s639_s12  }
   0xc   : > { %s34_s19 = sadd.s32 1, %s462_s16  ;;  %s43_s20 = sadd.s32 1, %s454_s14 }
   0xd   : > { %p36_p0 = scmp.ge.s32.totalorder %s34_s19, 2  ;;  %p50_p1 = scmp.ne.s32.totalorder %s454_s14, %s450_s13 }
   0xe   : > { %p51_p2 = scmp.eq.s32.totalorder %s466_s17, 0  ;;  %p56_p3 = scmp.ne.s32.totalorder %s450_s13, %s446_s12 }
   0xf   : > { %s645_s19 = smov (%p36_p0, %s34_s19), 0  ;;  %p57_p5 = scmp.eq.s32.totalorder %s266_s0, 0 }
  0x10   : > { %p532_p4 = por %p51_p2, %p50_p1  ;;  %s38_s22 = ssub.s32 %s462_s16, %s645_s19 }
  0x11   : > { %p82_p6 = scmp.eq.s32.totalorder %s266_s0, 1  ;;  %p41_p7 = scmp.eq.s32.totalorder %s38_s22, 0 }
  0x12   : > { %p538_p8 = por %p57_p5, %p56_p3  ;;  %p88_p10 = scmp.eq.s32.totalorder %s267_s18, 1 }
  0x13   : > { %p542_p9 = por %p82_p6, %p50_p1  ;;  %p295_p13 = scmp.lt.s32.totalorder %s466_s17, 2 }
  0x14   : > { %s547_s25 = scalar_select %p41_p7, %s454_s14, %s43_s20  }
  0x15   : > { %p549_p11 = por %p88_p10, %p56_p3  ;;  %s108_s27 = sand.u32 1, %s454_s14  }
  0x16   : > { %s270_s28 = sshll.u32 %s108_s27, 4  ;;  %s282_s29 = sshll.u32 %s462_s16, 8 }
  0x17   : > { %s119_s4 = scalar_lea.hbm %s631_s1, %s282_s29  ;;  %s112_s5 = scalar_lea.vmem [#allocation4], %s270_s28 }
  0x18   : > { %s120_s6 = sshll.u32 %s112_s5, 4  ;;  %p562_p0 = pnand %p295_p13, %p532_p4  ;;  %s121_s6 = int_to_ptr.vmem [resolvable:$true] %s120_s6 }
  0x19   : > { %p273_p1 = scmp.ge.s32.totalorder %s466_s17, 1  ;;  %s109_s8 = scalar_lea.sflag [#allocation5], %s108_s27 }
  0x1a   : > { %p358_p2 = pneg %p562_p0  ;;  %s369_s9 = scalar_lea.vmem %s121_s6, 256 }
  0x1b   : > { %p370_p3 = scmp.ne.s32.totalorder %s121_s6, %s369_s9  ;;  %s469_s10 = smov [#allocation4]  }
  0x1c   : > { %s374_s11 = sshll.u32 %s469_s10, 4  ;;  %s375_s11 = int_to_ptr.vmem [resolvable:$false] %s374_s11 }
  0x1d   : > { %p372_p5 = pnand %p370_p3, %p358_p2  ;;  %s376_s0 = scalar_lea.vmem %s375_s11, 512 }
  0x1e   : > { %p377_p7 = scmp.lt.s32.totalorder %s121_s6, %s375_s11  ;;  %p378_p10 = scmp.lt.s32.totalorder %s376_s0, %s369_s9 }
  0x1f   : > { %p373_p6 = pneg %p372_p5 }
  0x20   : > { %p379_p12 = por %p378_p10, %p377_p7 }
  0x22   : > { %p380_p4 = pnand %p379_p12, %p373_p6 }
  0x24   : > { %383 = shalt.err (!%p380_p4)
}
  0x25   : > { %s470_s18 = smov 128   ;;  %s471_s20 = smov 8  }
  0x26   : > { %290 = dma.hbm_to_vmem [thread:$0]  (!%p562_p0), %s119_s4, 256, %s121_s6, %s109_s8, %s470_s18, %s470_s18, %s471_s20  }
  0x27   : > { %p128_p13 = scmp.lt.s32.totalorder %s466_s17, 3 }
  0x29   : > { %p129_p2 = pnand %p273_p1, %p128_p13 }
  0x2a   : > { %s575_s21 = sand.u32 (!%p129_p2), 1, %s450_s13  }
  0x2b   : > { %132 = sbr.rel (%p129_p2) target bundleno = 75 (0x4b), region = 24  ;;  %s274_s22 = sshll.u32 (!%p129_p2), %s575_s21, 4 }
  0x2c   : > { %s135_s27 = scalar_lea.sflag (!%p129_p2), [#allocation5], %s575_s21  ;;  %s138_s28 = scalar_lea.vmem (!%p129_p2), [#allocation4], %s274_s22 }
  0x30   : > { %437 = dma.done.wait (%p538_p8), %s135_s27, 256  }
  0x31   : > { %439 = vsyncadd (%p538_p8), %s135_s27, 4294967040  ;;  %s276_s29 = sshll.u32 %s458_s15, 7  ;;  %s275_s3 = sshll.u32 %s575_s21, 3  ;;  %v161_v0 = vld [vmem:[%s138_s28] sm:$0xff]  ;;  %v277_v2 = vld [vmem:[%s138_s28 + $0x8] sm:$0xff] }
  0x32   : > { %s158_s30 = sld [smem:[#allocation3 + %s276_s29]]  ;;  %s159_s4 = sadd.s32 1, %s276_s29 }
  0x33   : > { %s160_s5 = sld [smem:[#allocation3 + %s159_s4]]  ;;  %s156_s6 = scalar_lea.vmem [#allocation7], %s275_s3 }
  0x34   : > { %s185_s7 = sshll.u32 %s156_s6, 4  ;;  %s183_s8 = scalar_lea.hbm %s632_s2, %s276_s29  ;;  %s585_s7 = int_to_ptr.vmem [resolvable:$true] %s185_s7 }
  0x35   : > { %s171_s9 = scalar_lea.sflag [#allocation6], %s575_s21  ;;  %s384_s10 = scalar_lea.vmem %s585_s7, 128 }
  0x36   : > { %p385_p8 = scmp.ne.s32.totalorder %s585_s7, %s384_s10  ;;  %s472_s11 = smov [#allocation7]  }
  0x37   : > { %s388_s0 = sshll.u32 %s472_s11, 4  ;;  %s389_s0 = int_to_ptr.vmem [resolvable:$false] %s388_s0 }
  0x38   : > { %v162_v1 = vstv %s158_s30  ;;  %p386_p12 = pnand %p385_p8, %p542_p9  ;;  %s390_s18 = scalar_lea.vmem %s389_s0, 256 }
  0x39   : > { %v163_v3 = vmul.f32 %v162_v1, %v161_v0  ;;  %v166_v4 = vstv %s160_s5  ;;  %p391_p1 = scmp.lt.s32.totalorder %s585_s7, %s389_s0  ;;  %p392_p3 = scmp.lt.s32.totalorder %s390_s18, %s384_s10 }
  0x3a   : > { %v167_v5 = vmul.f32 %v277_v2, %v166_v4  ;;  %p387_p0 = pneg %p386_p12 }
  0x3b   : > { %p393_p5 = por %p392_p3, %p391_p1 }
  0x3c   : > { %v168_v6 = vsub.f32 %v163_v3, %v167_v5 }
  0x3d   : > { %p394_p6 = pnand %p393_p5, %p387_p0 }
  0x3e   : > { %169 = vst [vmem:[%s156_s6] sm:$0xff] %v168_v6 }
  0x3f   : > { %397 = shalt.err (!%p394_p6)
}
  0x40   : > { %s398_s20 = scalar_lea.hbm %s183_s8, 128  ;;  %s402_s27 = scalar_lea.hbm %s632_s2, 256 }
  0x41   : > { %p399_p7 = scmp.ne.s32.totalorder %s183_s8, %s398_s20  ;;  %p403_p13 = scmp.lt.s32.totalorder %s183_s8, %s632_s2 }
  0x42   : > { %p404_p2 = scmp.lt.s32.totalorder %s402_s27, %s398_s20 }
  0x43   : > { %p400_p10 = pnand %p399_p7, %p542_p9 }
  0x44   : > { %p405_p8 = por %p404_p2, %p403_p13 }
  0x45   : > { %p401_p4 = pneg %p400_p10 }
  0x47   : > { %p406_p12 = pnand %p405_p8, %p401_p4 }
  0x49   : > { %409 = shalt.err (!%p406_p12)
}
  0x4a   : > { %285 = dma.vmem_to_hbm [thread:$0]  (%p542_p9), %s585_s7, 128, %s183_s8, %s171_s9  }
  0x4b PF: > { %s197_s30 = sand.u32 1, %s446_s12   ;;  %p638_p0 = scmp.ge.s32.totalorder %s466_s17, 2 }
  0x4c   : > { %s198_s3 = scalar_lea.sflag [#allocation6], %s197_s30 }
  0x4d   : > { %p292_p1 = pnand %p638_p0, %p549_p11 }
  0x4f   : > { %p293_p3 = pneg %p292_p1 }
  0x51   : > { %441 = dma.done.wait (%p293_p3), %s198_s3, 128  }
  0x52   : > { %443 = vsyncadd (%p293_p3), %s198_s3, 4294967168  ;;  %s22_s17 = sadd.s32 1, %s466_s17   ;;  %s639_s12 = smov %s450_s13 }
  0x53   : > { %p19_p5 = scmp.ge.s32.totalorder %s22_s17, 4   ;;  %s640_s13 = smov %s454_s14 }
  0x54   : > { %s641_s14 = smov %s547_s25  ;;  %s642_s15 = smov %s462_s16 }
  0x55   : > { %s643_s16 = smov %s645_s19  ;;  %21 = sbr.rel (!%p19_p5) target bundleno = 11 (0xb), region = 70 }
  0x5a   :  { %203 = vsyncpa [#allocation5], 1 }
  0x5b   :  { %205 = vsyncpa [#allocation5 + $0x1], 1 }
  0x5c   :  { %206 = vsyncpa [#allocation6], 1 }
  0x5d   :  { %208 = vsyncpa [#allocation6 + $0x1], 1 }

</bundles_post_ra>
